<compile_context>
chip_gen: v7x
topology: tpu7x:2x2x1
jax: 0.10.0
libtpu: 0.0.40
codegen_flags: <defaults>
</compile_context>

<pallas_src>
from typing import NamedTuple, Optional

import jax
import jax.numpy as jnp
from jax.experimental import pallas as pl
from jax.experimental.pallas import tpu as pltpu


_PALLAS_MIN_MACS = 1 << 22   # below ~4M MACs, let XLA fuse the matmul instead.
_TM_MAX = 512                # M tile ceiling (M = B*n_vars is usually tiny).
_TN_MAX = 2048               # N tile ceiling (tw_pad is typically 128-1024).


def _round_up(x: int, m: int) -> int:
    return ((x + m - 1) // m) * m


def _device_info():
    """(device_kind, tensorcores-per-chip heuristic, vmem_limit_bytes)."""
    kind = ""
    d = None
    try:
        d = jax.devices()[0]
        kind = d.device_kind.lower()
    except Exception:
        pass
    if "v7" in kind:
        cores, vmem_limit = 2, 56 * 1024 * 1024    # 64 MiB physical per TC
    elif "v5" in kind or "v6" in kind:
        cores, vmem_limit = 1, 96 * 1024 * 1024    # 128 MiB physical
    else:
        cores, vmem_limit = 1, 48 * 1024 * 1024    # conservative default
    try:
        cores = max(cores, int(getattr(d, "num_cores", 1) or 1))
    except Exception:
        pass
    return kind, cores, vmem_limit


def _divisor_tiles_desc(dim_pad: int, cap: Optional[int] = None):
    """Multiple-of-128 divisors of dim_pad (itself a multiple of 128), descending."""
    units = dim_pad // 128
    tiles = [d * 128 for d in range(units, 0, -1) if units % d == 0]
    if cap is not None:
        tiles = [t for t in tiles if t <= cap] or [128]
    return tiles


class FlattenHeadParams(NamedTuple):
    w_t: jax.Array   # [nf_pad, tw_pad]  pre-transposed, 128-padded weight
    b: jax.Array     # [1, tw_pad]       float32, 128-padded bias
    nf: int          # original in_features  (d_model * patch_num)
    tw: int          # original target_window


def prepare_flatten_head_params(weight, bias, *, compute_dtype=jnp.bfloat16):
    """One-time param prep: transpose nn.Linear weight [tw, nf] -> [nf, tw],
    zero-pad K and N to the minimum multiple of 128 (lane-dense N), and cast to
    the compute dtype (bf16 by default — the kernel is HBM-bound and
    accumulates in f32, so bf16 inputs ~halve traffic)."""
    tw, nf = weight.shape
    nf_pad = _round_up(nf, 128)
    tw_pad = _round_up(tw, 128)

    w_t = weight.T
    if compute_dtype is not None:
        w_t = w_t.astype(compute_dtype)
    if (nf_pad, tw_pad) != (nf, tw):
        w_t = jnp.pad(w_t, ((0, nf_pad - nf), (0, tw_pad - tw)))
    b2d = jnp.zeros((1, tw_pad), jnp.float32).at[:, :tw].set(
        bias.astype(jnp.float32))
    return FlattenHeadParams(w_t=w_t, b=b2d, nf=nf, tw=tw)


def _fullk_kernel(x_ref, w_ref, b_ref, o_ref):
    # Whole K resident: one MXU dot, bias add, lane-dense store. No scratch.
    o_ref[...] = (jnp.dot(x_ref[...], w_ref[...],
                          preferred_element_type=jnp.float32)
                  + b_ref[...]).astype(o_ref.dtype)


def _ktiled_kernel(x_ref, w_ref, b_ref, o_ref, acc_ref):
    # x_ref: [TM, TK], w_ref: [TK, TN], b_ref: [1, TN],
    # o_ref: [TM, TN], acc_ref: f32 [TM, TN] scratch (resident across K axis).
    k = pl.program_id(2)

    @pl.when(k == 0)
    def _():
        # Seed the accumulator with the bias; drops the add from the epilogue.
        acc_ref[...] = jnp.broadcast_to(b_ref[...], acc_ref.shape)

    acc_ref[...] += jnp.dot(x_ref[...], w_ref[...],
                            preferred_element_type=jnp.float32)

    @pl.when(k == pl.num_programs(2) - 1)
    def _():
        o_ref[...] = acc_ref[...].astype(o_ref.dtype)


def flatten_head_forward(x, params: FlattenHeadParams, *,
                         force_pallas: bool = False,
                         max_k_tile: Optional[int] = None):
    """x: [B, n_vars, d_model, patch_num] -> [B, n_vars, target_window]."""
    B, n_vars, d_model, patch_num = x.shape
    nf = d_model * patch_num
    assert nf == params.nf, "x feature dim does not match prepared params"
    tw = params.tw
    out_dtype = x.dtype
    M = B * n_vars
    nf_pad, tw_pad = params.w_t.shape

    # Flatten(start_dim=-2) + merge leading dims (glue, stays in JAX).
    x2d = x.reshape(M, nf)

    if not force_pallas and M * nf * tw < _PALLAS_MIN_MACS:
        # Tiny head: kernel launch / per-step overhead dominates; let XLA fuse.
        y = (x2d.astype(jnp.float32)
             @ params.w_t[:nf, :tw].astype(jnp.float32) + params.b[:, :tw])
        return y.astype(out_dtype).reshape(B, n_vars, tw)

    # Compute dtype follows the prepared weight (bf16 by default) so x and W
    # always match inside the dot; in a full model this cast fuses upstream.
    in_dtype = params.w_t.dtype
    in_isz = jnp.dtype(in_dtype).itemsize
    out_isz = jnp.dtype(out_dtype).itemsize
    if x2d.dtype != in_dtype:
        x2d = x2d.astype(in_dtype)

    _, n_cores, vmem_limit = _device_info()
    sublane = 16 if in_isz < 4 else 8

    # N tile: lane-dense; usually the whole 128-padded target_window (1 N tile).
    tn = _divisor_tiles_desc(tw_pad, cap=_TN_MAX)[0]
    n_tiles = tw_pad // tn

    # M tiling derived from the tile count (minimal padding, not round_up(M,tm)).
    m_tiles = pl.cdiv(_round_up(M, sublane), _TM_MAX)
    if n_cores >= 2 and m_tiles * n_tiles < 2 and M >= 2 * sublane:
        m_tiles = 2  # keep both v7x TensorCores busy on the parallel axes
    tm = _round_up(pl.cdiv(M, m_tiles), sublane)
    m_pad = m_tiles * tm

    # K tile: full K whenever the double-buffered footprint fits the budget.
    budget = int(0.7 * vmem_limit)
    tk = 128
    for cand in _divisor_tiles_desc(nf_pad, cap=max_k_tile):
        footprint = (2 * (tm * cand + cand * tn) * in_isz   # x, w (2x buffered)
                     + 2 * tm * tn * out_isz                # out (2x buffered)
                     + tm * tn * 4                          # f32 acc scratch
                     + 2 * tn * 4)                          # bias
        if footprint <= budget:
            tk = cand
            break
    k_tiles = nf_pad // tk

    # Pad activations only when actually misaligned, and only to the minimum.
    if (m_pad, nf_pad) != (M, nf):
        x2d = jnp.pad(x2d, ((0, m_pad - M), (0, nf_pad - nf)))

    cost = pl.CostEstimate(
        flops=2 * m_pad * nf_pad * tw_pad,
        transcendentals=0,
        bytes_accessed=(m_pad * nf_pad * in_isz * n_tiles
                        + nf_pad * tw_pad * in_isz * m_tiles
                        + tw_pad * 4
                        + m_pad * tw_pad * out_isz),
    )

    if k_tiles == 1:
        # Fast path: no accumulator, no K grid axis.
        grid = (m_tiles, n_tiles)
        kernel = _fullk_kernel
        in_specs = [
            pl.BlockSpec((tm, tk), lambda i, j: (i, 0)),   # activations
            pl.BlockSpec((tk, tn), lambda i, j: (0, j)),   # weight
            pl.BlockSpec((1, tn), lambda i, j: (0, j)),    # bias
        ]
        out_specs = pl.BlockSpec((tm, tn), lambda i, j: (i, j))
        scratch_shapes = []
        semantics = ("parallel", "parallel")
    else:
        grid = (m_tiles, n_tiles, k_tiles)
        kernel = _ktiled_kernel
        in_specs = [
            pl.BlockSpec((tm, tk), lambda i, j, k: (i, k)),
            pl.BlockSpec((tk, tn), lambda i, j, k: (k, j)),
            pl.BlockSpec((1, tn), lambda i, j, k: (0, j)),
        ]
        out_specs = pl.BlockSpec((tm, tn), lambda i, j, k: (i, j))
        scratch_shapes = [pltpu.VMEM((tm, tn), jnp.float32)]
        semantics = ("parallel", "parallel", "arbitrary")

    out = pl.pallas_call(
        kernel,
        out_shape=jax.ShapeDtypeStruct((m_pad, tw_pad), out_dtype),
        grid_spec=pltpu.PrefetchScalarGridSpec(
            num_scalar_prefetch=0,
            grid=grid,
            in_specs=in_specs,
            out_specs=out_specs,
            scratch_shapes=scratch_shapes,
        ),
        compiler_params=pltpu.CompilerParams(
            dimension_semantics=semantics,
            vmem_limit_bytes=vmem_limit,
        ),
        cost_estimate=cost,
    )(x2d, params.w_t, params.b)

    # TODO(synk): dropout is identity in eval mode (head_dropout defaults to 0);
    # no RNG/dropout path implemented.
    if (m_pad, tw_pad) != (M, tw):
        out = out[:M, :tw]
    return out.reshape(B, n_vars, tw)


if __name__ == "__main__":
    # Small shapes consistent with the module's forward.
    B, n_vars, d_model, patch_num = 2, 4, 16, 16
    nf = d_model * patch_num          # 256
    target_window = 96                # deliberately not 128-aligned

    key = jax.random.PRNGKey(0)
    kx, kw, kb = jax.random.split(key, 3)

    x = jax.random.normal(kx, (B, n_vars, d_model, patch_num), dtype=jnp.float32)
    # nn.Linear(nf, target_window) parameter shapes.
    weight = jax.random.normal(kw, (target_window, nf), dtype=jnp.float32) * 0.05
    bias = jax.random.normal(kb, (target_window,), dtype=jnp.float32) * 0.05

    # Plain-JAX reference of the PyTorch forward.
    ref = x.reshape(B, n_vars, nf) @ weight.T + bias

    # 1) f32 params -> full-K fast-path kernel, exact check.
    params_f32 = prepare_flatten_head_params(weight, bias, compute_dtype=jnp.float32)
    y32 = jax.block_until_ready(flatten_head_forward(x, params_f32, force_pallas=True))
    assert y32.shape == (B, n_vars, target_window)
    assert jnp.allclose(y32, ref, atol=1e-5, rtol=1e-5)

    # 2) Default bf16 params (production path): halved HBM traffic, f32 accumulate.
    params_bf16 = prepare_flatten_head_params(weight, bias)
    ybf = jax.block_until_ready(flatten_head_forward(x, params_bf16, force_pallas=True))
    assert ybf.shape == (B, n_vars, target_window)
    assert jnp.allclose(ybf, ref, atol=5e-2, rtol=5e-2)

    # 3) Exercise the K-tiled accumulator path too (tk capped -> 2 K steps).
    ykt = jax.block_until_ready(
        flatten_head_forward(x, params_f32, force_pallas=True, max_k_tile=128))
    assert jnp.allclose(ykt, ref, atol=1e-5, rtol=1e-5)

    print("KERNEL_OK")
</pallas_src>

<mosaic_0001>
module attributes {stable_mosaic.version = 11 : i64} {
  func.func @_fullk_kernel(%arg0: i32, %arg1: i32, %arg2: memref<8x256xf32, #tpu.memory_space<vmem>>, %arg3: memref<256x128xf32, #tpu.memory_space<vmem>>, %arg4: memref<1x128xf32, #tpu.memory_space<vmem>>, %arg5: memref<8x128xf32, #tpu.memory_space<vmem>>) attributes {dimension_semantics = [#tpu.dimension_semantics<parallel>, #tpu.dimension_semantics<parallel>], iteration_bounds = array<i64: 1, 1>, scalar_prefetch = 0 : i64, scratch_operands = 0 : i64, tpu.core_type = #tpu.core_type<tc>, window_params = [{transform_indices = @transform_0, window_bounds = array<i64: 8, 256>}, {transform_indices = @transform_1, window_bounds = array<i64: 256, 128>}, {transform_indices = @transform_2, window_bounds = array<i64: 1, 128>}, {transform_indices = @transform_3, window_bounds = array<i64: 8, 128>}]} {
    %c0 = arith.constant 0 : index
    %c0_0 = arith.constant 0 : index
    %0 = vector.load %arg2[%c0, %c0_0] : memref<8x256xf32, #tpu.memory_space<vmem>>, vector<8x256xf32>
    %c0_1 = arith.constant 0 : index
    %c0_2 = arith.constant 0 : index
    %1 = vector.load %arg3[%c0_1, %c0_2] : memref<256x128xf32, #tpu.memory_space<vmem>>, vector<256x128xf32>
    %cst = arith.constant dense<0.000000e+00> : vector<8x128xf32>
    %2 = tpu.matmul %0, %1, %cst {dimension_numbers = #tpu.dot_dimension_numbers<[1], [0], [0], [1], [0, 0, 1, 1], [], []>} : vector<8x256xf32>, vector<256x128xf32>, vector<8x128xf32> -> vector<8x128xf32>
    %c0_3 = arith.constant 0 : index
    %c0_4 = arith.constant 0 : index
    %3 = vector.load %arg4[%c0_3, %c0_4] : memref<1x128xf32, #tpu.memory_space<vmem>>, vector<1x128xf32>
    %4 = vector.broadcast %3 : vector<1x128xf32> to vector<8x128xf32>
    %5 = arith.addf %2, %4 : vector<8x128xf32>
    %c0_5 = arith.constant 0 : index
    %c0_6 = arith.constant 0 : index
    %6 = vector.load %arg5[%c0_5, %c0_6] : memref<8x128xf32, #tpu.memory_space<vmem>>, vector<8x128xf32>
    tpu.vector_store %arg5[%c0_5, %c0_6], %5 {strides = array<i32>} : memref<8x128xf32, #tpu.memory_space<vmem>>, vector<8x128xf32>,
    return
  }
  func.func @transform_0(%arg0: i32, %arg1: i32) -> (i32, i32) {
    %c0_i32 = arith.constant 0 : i32
    %c0_i32_0 = arith.constant 0 : i32
    return %arg0, %c0_i32 : i32, i32
  }
  func.func @transform_1(%arg0: i32, %arg1: i32) -> (i32, i32) {
    %c0_i32 = arith.constant 0 : i32
    %c0_i32_0 = arith.constant 0 : i32
    return %c0_i32, %arg1 : i32, i32
  }
  func.func @transform_2(%arg0: i32, %arg1: i32) -> (i32, i32) {
    %c0_i32 = arith.constant 0 : i32
    %c0_i32_0 = arith.constant 0 : i32
    return %c0_i32, %arg1 : i32, i32
  }
  func.func @transform_3(%arg0: i32, %arg1: i32) -> (i32, i32) {
    %c0_i32 = arith.constant 0 : i32
    return %arg0, %arg1 : i32, i32
  }
}

</mosaic_0001>

<bundles_post_ra>
// kernel: tpu_custom_call.1
= control target key start
LH: loop header
LB: loop body
LE: loop exit
PB: predicated region body
PF: predicated region fallthrough
CT: control target
= control target key end

     0   :  { %8 = vsyncpa [#allocation3], 0  ;;  %s385_s0 = inlined_call_operand.hbm [shape: f32[8,256], index: 0, kind: input, shape index: {}]   ;;  %s386_s1 = inlined_call_operand.hbm [shape: f32[256,128], index: 1, kind: input, shape index: {}]   ;;  %s387_s2 = inlined_call_operand.vmem [shape: f32[1,128], index: 2, kind: input, shape index: {}]   ;;  %s388_s3 = inlined_call_operand.hbm [shape: f32[8,128], index: 3, kind: output, shape index: {}]  }
   0x1   :  { %9 = vsyncpa [#allocation6], 0 }
   0x2   :  { %10 = vsyncpa [#allocation4], 0  ;;  %s314_s12 = smov [#allocation2]   ;;  %s315_s14 = smov [#allocation5]  }
   0x3   :  { %s17_s13 = sshll.u32 %s314_s12, 4  ;;  %s26_s15 = sshll.u32 %s315_s14, 4  ;;  %s18_s13 = int_to_ptr.vmem [resolvable:$true] %s17_s13  ;;  %s339_s15 = int_to_ptr.vmem [resolvable:$true] %s26_s15 }
   0x4   :  { %s242_s18 = scalar_lea.hbm %s385_s0, 256 }
   0x5   :  { %p243_p0 = scmp.ne.s32.totalorder %s385_s0, %s242_s18  ;;  %p246_p1 = scmp.lt.u32.totalorder %s242_s18, %s385_s0 }
   0x7   :  { %p248_p2 = pnand %p246_p1, %p243_p0 }
   0x9   :  { %251 = shalt.err (!%p248_p2)
}
   0xa   :  { %s252_s23 = scalar_lea.vmem %s18_s13, 256  ;;  %p257_p4 = scmp.lt.s32.totalorder %s18_s13, %s18_s13 }
   0xb   :  { %p253_p3 = scmp.ne.s32.totalorder %s18_s13, %s252_s23  ;;  %p258_p5 = scmp.lt.s32.totalorder %s252_s23, %s252_s23 }
   0xd   :  { %p259_p6 = por %p258_p5, %p257_p4 }
   0xf   :  { %p260_p7 = pnand %p259_p6, %p253_p3 }
  0x11   :  { %263 = shalt.err (!%p260_p7)
}
  0x12   :  { %20 = dma.hbm_to_vmem [thread:$0]  %s385_s0, 256, %s18_s13, [#allocation3]  }
  0x13   :  { %s264_s28 = scalar_lea.hbm %s386_s1, 4096 }
  0x14   :  { %p265_p8 = scmp.ne.s32.totalorder %s386_s1, %s264_s28  ;;  %p268_p9 = scmp.lt.u32.totalorder %s264_s28, %s386_s1 }
  0x16   :  { %p270_p10 = pnand %p268_p9, %p265_p8 }
  0x18   :  { %273 = shalt.err (!%p270_p10)
}
  0x19   :  { %s274_s6 = scalar_lea.vmem %s339_s15, 4096  ;;  %p279_p12 = scmp.lt.s32.totalorder %s339_s15, %s339_s15 }
  0x1a   :  { %p275_p11 = scmp.ne.s32.totalorder %s339_s15, %s274_s6  ;;  %p280_p13 = scmp.lt.s32.totalorder %s274_s6, %s274_s6 }
  0x1c   :  { %p281_p0 = por %p280_p13, %p279_p12 }
  0x1e   :  { %p282_p1 = pnand %p281_p0, %p275_p11 }
  0x20   :  { %285 = shalt.err (!%p282_p1)
}
  0x21   :  { %s316_s0 = smov 128   ;;  %s317_s7 = smov 8  }
  0x22   :  { %32 = dma.hbm_to_vmem [thread:$0]  %s386_s1, 4096, %s339_s15, [#allocation6], %s316_s0, %s316_s0, %s317_s7  }
  0x23   :  { %308 = dma.done.wait [#allocation3], 256  }
  0x24   :  { %309 = vsyncadd [#allocation3], 4294967040 }
  0x25   :  { %310 = dma.done.wait [#allocation6], 4096  }
  0x26   :  { %311 = vsyncadd [#allocation6], 4294963200  ;;  %v59_v0 = vld [vmem:[#allocation5 + $0x80] sm:$0xff]  ;;  %v60_v1 = vld [vmem:[#allocation5 + $0x88] sm:$0xff]  ;;  %s318_s11 = smov [#allocation7]  }
  0x27   :  { %v43_v2 = vld [vmem:[#allocation5] sm:$0xff]  ;;  %v205_v3 = vpack.c.bf16 %v60_v1, %v59_v0  ;;  %v44_v4 = vld [vmem:[#allocation5 + $0x8] sm:$0xff]  ;;  %v61_v5 = vld [vmem:[#allocation5 + $0x90] sm:$0xff]  ;;  %s159_s12 = sshll.u32 %s318_s11, 4  ;;  %s160_s12 = int_to_ptr.vmem [resolvable:$true] %s159_s12 }
  0x28   :  { %v62_v6 = vld [vmem:[#allocation5 + $0x98] sm:$0xff]  ;;  %v207_v7 = vpack.c.bf16 %v44_v4, %v43_v2  ;;  %v45_v9 = vld [vmem:[#allocation5 + $0x10] sm:$0xff]  ;;  %v63_v11 = vld [vmem:[#allocation5 + $0xa0] sm:$0xff]  ;;  %s286_s13 = scalar_lea.vmem %s160_s12, 128  ;;  %p291_p3 = scmp.lt.s32.totalorder %s160_s12, %s160_s12 }
  0x29   :  { %v209_v8 = vpack.c.bf16 %v62_v6, %v61_v5  ;;  %v46_v10 = vld [vmem:[#allocation5 + $0x18] sm:$0xff]  ;;  %206 = vmatprep.subr.bf16.mxu0 %v205_v3  ;;  %v64_v12 = vld [vmem:[#allocation5 + $0xa8] sm:$0xff]  ;;  %v47_v15 = vld [vmem:[#allocation5 + $0x20] sm:$0xff]  ;;  %p287_p2 = scmp.ne.s32.totalorder %s160_s12, %s286_s13  ;;  %p292_p4 = scmp.lt.s32.totalorder %s286_s13, %s286_s13 }
  0x2a   :  { %208 = vmatpush3.bf16.msra.mxu0 %v207_v7  ;;  %v211_v13 = vpack.c.bf16 %v46_v10, %v45_v9  ;;  %v213_v14 = vpack.c.bf16 %v64_v12, %v63_v11  ;;  %v48_v16 = vld [vmem:[#allocation5 + $0x28] sm:$0xff]  ;;  %v65_v17 = vld [vmem:[#allocation5 + $0xb0] sm:$0xff]  ;;  %v66_v18 = vld [vmem:[#allocation5 + $0xb8] sm:$0xff] }
  0x2b   :  { %210 = vmatprep.subr.bf16.mxu0 %v209_v8  ;;  %v215_v19 = vpack.c.bf16 %v48_v16, %v47_v15  ;;  %v217_v20 = vpack.c.bf16 %v66_v18, %v65_v17  ;;  %v49_v21 = vld [vmem:[#allocation5 + $0x30] sm:$0xff]  ;;  %v50_v22 = vld [vmem:[#allocation5 + $0x38] sm:$0xff]  ;;  %v67_v23 = vld [vmem:[#allocation5 + $0xc0] sm:$0xff]  ;;  %p293_p5 = por %p292_p4, %p291_p3 }
  0x2c   :  { %v68_v24 = vld [vmem:[#allocation5 + $0xc8] sm:$0xff]  ;;  %v42_v25 = vld [vmem:[#allocation2 + $0x8] sm:$0xff]  ;;  %v219_v26 = vpack.c.bf16 %v50_v22, %v49_v21  ;;  %v51_v28 = vld [vmem:[#allocation5 + $0x40] sm:$0xff] }
  0x2d   :  { %146 = vmatprep.mubr.f32.mxu0 %v42_v25  ;;  %v221_v27 = vpack.c.bf16 %v68_v24, %v67_v23  ;;  %v52_v29 = vld [vmem:[#allocation5 + $0x48] sm:$0xff]  ;;  %v69_v30 = vld [vmem:[#allocation5 + $0xd0] sm:$0xff]  ;;  %v70_v31 = vld [vmem:[#allocation5 + $0xd8] sm:$0xff]  ;;  %p294_p6 = pnand %p293_p5, %p287_p2 }
  0x2e   :  { %212 = vmatpush3.bf16.msra.mxu0 %v211_v13  ;;  %v223_v32 = vpack.c.bf16 %v52_v29, %v51_v28  ;;  %v225_v33 = vpack.c.bf16 %v70_v31, %v69_v30  ;;  %v53_v34 = vld [vmem:[#allocation5 + $0x50] sm:$0xff]  ;;  %v54_v35 = vld [vmem:[#allocation5 + $0x58] sm:$0xff]  ;;  %v71_v36 = vld [vmem:[#allocation5 + $0xe0] sm:$0xff] }
  0x2f   :  { %214 = vmatprep.subr.bf16.mxu0 %v213_v14  ;;  %v72_v37 = vld [vmem:[#allocation5 + $0xe8] sm:$0xff]  ;;  %v227_v38 = vpack.c.bf16 %v54_v35, %v53_v34  ;;  %v55_v40 = vld [vmem:[#allocation5 + $0x60] sm:$0xff]  ;;  %v73_v42 = vld [vmem:[#allocation5 + $0xf0] sm:$0xff] }
  0x30   :  { %v229_v39 = vpack.c.bf16 %v72_v37, %v71_v36  ;;  %v56_v41 = vld [vmem:[#allocation5 + $0x68] sm:$0xff]  ;;  %v74_v43 = vld [vmem:[#allocation5 + $0xf8] sm:$0xff]  ;;  %v57_v46 = vld [vmem:[#allocation5 + $0x70] sm:$0xff] }
  0x31   :  { %v231_v44 = vpack.c.bf16 %v56_v41, %v55_v40  ;;  %v233_v45 = vpack.c.bf16 %v74_v43, %v73_v42  ;;  %v58_v47 = vld [vmem:[#allocation5 + $0x78] sm:$0xff]  ;;  %v41_v49 = vld [vmem:[#allocation2] sm:$0xff] }
  0x32   :  { %216 = vmatpush3.bf16.msra.mxu0 %v215_v19  ;;  %v235_v48 = vpack.c.bf16 %v58_v47, %v57_v46  ;;  %v169_v51 = vld [vmem:[%s387_s2] ss:$0 sm:$0xff] }
  0x33   :  { %218 = vmatprep.subr.bf16.mxu0 %v217_v20 }
  0x36   :  { %220 = vmatpush3.bf16.msra.mxu0 %v219_v26 }
  0x37   :  { %222 = vmatprep.subr.bf16.mxu0 %v221_v27 }
  0x3a   :  { %224 = vmatpush3.bf16.msra.mxu0 %v223_v32 }
  0x3b   :  { %226 = vmatprep.subr.bf16.mxu0 %v225_v33 }
  0x3e   :  { %228 = vmatpush3.bf16.msra.mxu0 %v227_v38 }
  0x3f   :  { %230 = vmatprep.subr.bf16.mxu0 %v229_v39 }
  0x42   :  { %232 = vmatpush3.bf16.msra.mxu0 %v231_v44 }
  0x43   :  { %234 = vmatprep.subr.bf16.mxu0 %v233_v45 }
  0x46   :  { %236 = vmatpush3.bf16.msra.mxu0 %v235_v48 }
  0x49   :  { %147 = vmatmul.mubr.f32.vlgmr.msra.gmra.mrb[0].mxu0 %v41_v49 }
 0x11c   :  { %v202_v50 = vpop.f32.mrb[0].mxu0 }
 0x11d   :  { %v203_v52 = vpop.f32.mrb[1].mxu0 }
 0x11e   :  { %v204_v53 = vadd.f32 %v203_v52, %v202_v50 }
 0x120   :  { %v149_v54 = vadd.f32 %v204_v53, %v169_v51 }
 0x122   :  { %152 = vst [vmem:[#allocation7] sm:$0xff] %v149_v54 }
 0x123   :  { %297 = shalt.err (!%p294_p6)
}
 0x124   :  { %s298_s16 = scalar_lea.hbm %s388_s3, 128 }
 0x125   :  { %p299_p7 = scmp.ne.s32.totalorder %s388_s3, %s298_s16  ;;  %p302_p8 = scmp.lt.u32.totalorder %s298_s16, %s388_s3 }
 0x127   :  { %p304_p9 = pnand %p302_p8, %p299_p7 }
 0x129   :  { %307 = shalt.err (!%p304_p9)
}
 0x12a   :  { %162 = dma.vmem_to_hbm [thread:$0]  %s160_s12, 128, %s388_s3, [#allocation4]  }
 0x12b   :  { %312 = dma.done.wait [#allocation4], 128  }
 0x12c   :  { %313 = vsyncadd [#allocation4], 4294967168 }
 0x12d   :  { %166 = vsyncpa [#allocation3], 1 }
 0x12e   :  { %167 = vsyncpa [#allocation6], 1 }
 0x12f   :  { %168 = vsyncpa [#allocation4], 1 }

</bundles_post_ra>
